<compile_context>
chip_gen: v5e
topology: v5e:2x2
jax: 0.10.0
libtpu: 0.0.40
codegen_flags: <defaults>
</compile_context>

<pallas_src>
import functools
import math

import jax
import jax.numpy as jnp
import numpy as np
from jax.experimental import pallas as pl
from jax.experimental.pallas import tpu as pltpu

GN_GROUPS = 32      # normalization(channels) == GroupNorm32(32, channels)
GN_EPS = 1e-5
VMEM_LIMIT_BYTES = 48 * 1024 * 1024


# ---------------------------------------------------------------------------
# tiling helpers
# ---------------------------------------------------------------------------
def _pick_t_tile(T, target=512):
    """Largest multiple of 128 that divides T and is <= target; else full T."""
    if T <= target:
        return T
    best = None
    t = 128
    while t <= target:
        if T % t == 0:
            best = t
        t += 128
    # TODO(synk): if T > target and not a multiple of 128 we fall back to full-T blocks.
    return best if best is not None else T


def _pick_head_group(H, ch):
    """Largest divisor G of H with G*ch <= 128 (>=16 sublanes per bf16 block when possible)."""
    best = 1
    for g in range(1, H + 1):
        if H % g == 0 and g * ch <= 128:
            best = g
    return best


# ---------------------------------------------------------------------------
# GroupNorm statistics hoisted to XLA and folded into per-(batch,channel) affine
# ---------------------------------------------------------------------------
def _gn_affine(x, gamma, beta):
    b, C, T = x.shape
    xf = x.astype(jnp.float32).reshape(b, GN_GROUPS, (C // GN_GROUPS) * T)
    mean = jnp.mean(xf, axis=-1)                                   # (b, G)
    var = jnp.mean(jnp.square(xf - mean[..., None]), axis=-1)      # (b, G)
    rstd = jax.lax.rsqrt(var + GN_EPS)
    reps = C // GN_GROUPS
    mean_c = jnp.repeat(mean, reps, axis=1)                        # (b, C)
    rstd_c = jnp.repeat(rstd, reps, axis=1)
    scl = rstd_c * gamma[None, :]
    bias = beta[None, :] - mean_c * scl
    return scl[..., None], bias[..., None]                         # (b, C, 1) f32


# ---------------------------------------------------------------------------
# Kernel A: GroupNorm affine + 1x1 qkv projection   (per batch n, T tile t)
# ---------------------------------------------------------------------------
def _norm_qkv_kernel(x_ref, scl_ref, bias_ref, w_ref, wb_ref, o_ref):
    xn = x_ref[...].astype(jnp.float32) * scl_ref[...] + bias_ref[...]     # (C, tT) f32
    acc = jnp.dot(w_ref[...], xn.astype(jnp.bfloat16),
                  preferred_element_type=jnp.float32)                      # (3C, tT) f32
    o_ref[...] = (acc + wb_ref[...]).astype(o_ref.dtype)


def _norm_qkv(x, scl, bias, w, wb):
    b, C, T = x.shape
    tT = _pick_t_tile(T)
    return pl.pallas_call(
        _norm_qkv_kernel,
        out_shape=jax.ShapeDtypeStruct((b, 3 * C, T), jnp.bfloat16),
        grid=(b, T // tT),
        in_specs=[
            pl.BlockSpec((None, C, tT), lambda n, t: (n, 0, t)),
            pl.BlockSpec((None, C, 1), lambda n, t: (n, 0, 0)),
            pl.BlockSpec((None, C, 1), lambda n, t: (n, 0, 0)),
            pl.BlockSpec((3 * C, C), lambda n, t: (0, 0)),
            pl.BlockSpec((3 * C, 1), lambda n, t: (0, 0)),
        ],
        out_specs=pl.BlockSpec((None, 3 * C, tT), lambda n, t: (n, 0, t)),
        compiler_params=pltpu.CompilerParams(
            dimension_semantics=("parallel", "parallel"),
            vmem_limit_bytes=VMEM_LIMIT_BYTES),
    )(x, scl, bias, w, wb)


# ---------------------------------------------------------------------------
# Kernel B: cross-stream attention, KV-tiled online softmax, G heads per step.
#   scores are kept transposed: (kv, T) so the running max/sum are lane-dense
#   (1, T) and the post-PV normalization broadcasts without relayouts.
# ---------------------------------------------------------------------------
def _mutual_attn_kernel(q_ref, k_ref, v_ref, o_ref, m_sc, l_sc, acc_sc, *, heads_per_step):
    kv_step = pl.program_id(2)

    @pl.when(kv_step == 0)
    def _init():
        m_sc[...] = jnp.full(m_sc.shape, -jnp.inf, dtype=m_sc.dtype)
        l_sc[...] = jnp.zeros(l_sc.shape, dtype=l_sc.dtype)
        acc_sc[...] = jnp.zeros(acc_sc.shape, dtype=acc_sc.dtype)

    for j in range(heads_per_step):
        q = q_ref[j]                     # (ch, T)   bf16, 1/sqrt(ch) already folded into q
        k = k_ref[j]                     # (ch, tKV) bf16
        v = v_ref[j]                     # (ch, tKV) bf16
        # st[s, t] = sum_c k[c, s] * q[c, t]  (== weight[t, s] of the reference)
        st = jax.lax.dot_general(k, q, (((0,), (0,)), ((), ())),
                                 preferred_element_type=jnp.float32)          # (tKV, T) f32
        m_prev = m_sc[j]                                                      # (1, T)
        m_new = jnp.maximum(m_prev, jnp.max(st, axis=0, keepdims=True))       # (1, T)
        alpha = jnp.exp(m_prev - m_new)                                       # (1, T)
        p = jnp.exp(st - m_new)                                               # (tKV, T) un-normalized
        l_sc[j] = alpha * l_sc[j] + jnp.sum(p, axis=0, keepdims=True)
        # pv[c, t] = sum_s v[c, s] * p[s, t]
        pv = jax.lax.dot_general(v, p.astype(v.dtype), (((1,), (0,)), ((), ())),
                                 preferred_element_type=jnp.float32)          # (ch, T) f32
        acc_sc[j] = acc_sc[j] * alpha + pv
        m_sc[j] = m_new

    @pl.when(kv_step == pl.num_programs(2) - 1)
    def _finalize():
        for j in range(heads_per_step):
            inv_l = pl.reciprocal(l_sc[j], approx=True)                       # (1, T), EUP
            o_ref[j] = (acc_sc[j] * inv_l).astype(o_ref.dtype)


def _mutual_attention(qkv_q, qkv_kv, H, new_order):
    """q from qkv_q, k/v from qkv_kv. Returns (b, H, ch, T) bf16."""
    b, width, T = qkv_q.shape
    ch = width // (3 * H)
    G = _pick_head_group(H, ch)
    tKV = _pick_t_tile(T)
    nKV = T // tKV

    if new_order:
        # QKVAttention: width ordered [Q(H,ch), K(H,ch), V(H,ch)]  -> (b, 3, H, ch, T) (free view)
        qq = qkv_q.reshape(b, 3, H, ch, T)
        kv = qkv_kv.reshape(b, 3, H, ch, T)
        q_spec = pl.BlockSpec((None, None, G, ch, T), lambda n, g, s: (n, 0, g, 0, 0))
        k_spec = pl.BlockSpec((None, None, G, ch, tKV), lambda n, g, s: (n, 1, g, 0, s))
        v_spec = pl.BlockSpec((None, None, G, ch, tKV), lambda n, g, s: (n, 2, g, 0, s))
    else:
        # QKVAttentionLegacy: width ordered [head0: q,k,v | head1: q,k,v | ...] -> (b, H, 3, ch, T)
        qq = qkv_q.reshape(b, H, 3, ch, T)
        kv = qkv_kv.reshape(b, H, 3, ch, T)
        q_spec = pl.BlockSpec((None, G, None, ch, T), lambda n, g, s: (n, g, 0, 0, 0))
        k_spec = pl.BlockSpec((None, G, None, ch, tKV), lambda n, g, s: (n, g, 1, 0, s))
        v_spec = pl.BlockSpec((None, G, None, ch, tKV), lambda n, g, s: (n, g, 2, 0, s))

    return pl.pallas_call(
        functools.partial(_mutual_attn_kernel, heads_per_step=G),
        out_shape=jax.ShapeDtypeStruct((b, H, ch, T), jnp.bfloat16),
        grid=(b, H // G, nKV),
        in_specs=[q_spec, k_spec, v_spec],
        out_specs=pl.BlockSpec((None, G, ch, T), lambda n, g, s: (n, g, 0, 0)),
        scratch_shapes=[
            pltpu.VMEM((G, 1, T), jnp.float32),    # running row-max (lane-dense)
            pltpu.VMEM((G, 1, T), jnp.float32),    # running row-sum (lane-dense)
            pltpu.VMEM((G, ch, T), jnp.float32),   # un-normalized PV accumulator
        ],
        compiler_params=pltpu.CompilerParams(
            dimension_semantics=("parallel", "parallel", "arbitrary"),
            vmem_limit_bytes=VMEM_LIMIT_BYTES),
    )(qq, kv, kv)


# ---------------------------------------------------------------------------
# Kernel C: 1x1 output projection + residual add   (per batch n, T tile t)
# ---------------------------------------------------------------------------
def _proj_residual_kernel(a_ref, w_ref, b_ref, x_ref, o_ref):
    h = jnp.dot(w_ref[...], a_ref[...], preferred_element_type=jnp.float32)   # (C, tT) f32
    o_ref[...] = (x_ref[...].astype(jnp.float32) + h + b_ref[...]).astype(o_ref.dtype)


def _proj_residual(a, w, wb, x):
    b, C, T = x.shape
    tT = _pick_t_tile(T)
    return pl.pallas_call(
        _proj_residual_kernel,
        out_shape=jax.ShapeDtypeStruct((b, C, T), x.dtype),   # model dtype, not forced f32
        grid=(b, T // tT),
        in_specs=[
            pl.BlockSpec((None, C, tT), lambda n, t: (n, 0, t)),
            pl.BlockSpec((C, C), lambda n, t: (0, 0)),
            pl.BlockSpec((C, 1), lambda n, t: (0, 0)),
            pl.BlockSpec((None, C, tT), lambda n, t: (n, 0, t)),
        ],
        out_specs=pl.BlockSpec((None, C, tT), lambda n, t: (n, 0, t)),
        compiler_params=pltpu.CompilerParams(
            dimension_semantics=("parallel", "parallel"),
            vmem_limit_bytes=VMEM_LIMIT_BYTES),
    )(a, w, wb, x)


# ---------------------------------------------------------------------------
# Wrapper
# ---------------------------------------------------------------------------
def mutual_attention_forward(x1, x2, params, num_heads, use_new_attention_order=False):
    assert x1.shape == x2.shape
    b, c = x1.shape[:2]
    T = int(np.prod(x1.shape[2:]))
    H = num_heads
    ch = c // H

    x1f = x1.reshape(b, c, T)
    x2f = x2.reshape(b, c, T)

    # Fold the full 1/sqrt(ch) logit scale into the q rows of the qkv projection
    # (reference applies ch^-1/4 to both q and k; product is identical).
    scale = 1.0 / math.sqrt(ch)
    if use_new_attention_order:
        qrows = jnp.arange(3 * c) < c
    else:
        qrows = (jnp.arange(3 * c) % (3 * ch)) < ch
    qscale = jnp.where(qrows, scale, 1.0).astype(jnp.float32)

    def prep_qkv(w, bias):
        wf = (w.astype(jnp.float32) * qscale[:, None]).astype(jnp.bfloat16)
        bf = (bias.astype(jnp.float32) * qscale)[:, None]
        return wf, bf

    w_qkv1, b_qkv1 = prep_qkv(params["qkv1_w"], params["qkv1_b"])
    w_qkv2, b_qkv2 = prep_qkv(params["qkv2_w"], params["qkv2_b"])
    w_p1 = params["proj1_w"].astype(jnp.bfloat16)
    w_p2 = params["proj2_w"].astype(jnp.bfloat16)
    b_p1 = params["proj1_b"].astype(jnp.float32)[:, None]
    b_p2 = params["proj2_b"].astype(jnp.float32)[:, None]

    # GroupNorm statistics hoisted (cheap XLA reduction), folded into scale/bias.
    scl1, bias1 = _gn_affine(x1f, params["norm1_g"], params["norm1_b"])
    scl2, bias2 = _gn_affine(x2f, params["norm2_g"], params["norm2_b"])

    # Kernel A (per stream): GN affine + qkv GEMM  -> (b, 3C, T) bf16
    qkv1 = _norm_qkv(x1f, scl1, bias1, w_qkv1, b_qkv1)
    qkv2 = _norm_qkv(x2f, scl2, bias2, w_qkv2, b_qkv2)

    # Kernel B (per direction): cross-stream attention  -> (b, H, ch, T) bf16
    h1 = _mutual_attention(qkv1, qkv2, H, use_new_attention_order)
    h2 = _mutual_attention(qkv2, qkv1, H, use_new_attention_order)

    # Kernel C (per stream): proj_out + residual  -> (b, C, T) in the input dtype
    out1 = _proj_residual(h1.reshape(b, c, T), w_p1, b_p1, x1f)
    out2 = _proj_residual(h2.reshape(b, c, T), w_p2, b_p2, x2f)

    return out1.reshape(x1.shape), out2.reshape(x2.shape)


# ---------------------------------------------------------------------------
# Module wrapper (synthetic parameters with the nn.GroupNorm / conv_nd(1,...) shapes).
# NOTE: PyTorch zero-initializes proj_out (zero_module); small random values are
# used here so the attention path is numerically exercised.
# ---------------------------------------------------------------------------
class MutualAttentionBlock:
    def __init__(self, channels, num_heads=1, num_head_channels=-1,
                 use_checkpoint=False, use_new_attention_order=False, *, key=None):
        self.channels = channels
        if num_head_channels == -1:
            self.num_heads = num_heads
        else:
            assert channels % num_head_channels == 0
            self.num_heads = channels // num_head_channels
        assert channels % self.num_heads == 0
        assert channels % GN_GROUPS == 0, "normalization() uses GroupNorm(32, channels)"
        self.use_new_attention_order = use_new_attention_order
        # TODO(synk): use_checkpoint is a training-time feature (gradient checkpointing); ignored.

        key = key if key is not None else jax.random.PRNGKey(0)
        ks = jax.random.split(key, 12)
        C = channels
        nrm = lambda k, shape, s: s * jax.random.normal(k, shape, dtype=jnp.float32)
        self.params = {
            "norm1_g": 1.0 + nrm(ks[0], (C,), 0.1),
            "norm1_b": nrm(ks[1], (C,), 0.1),
            "norm2_g": 1.0 + nrm(ks[2], (C,), 0.1),
            "norm2_b": nrm(ks[3], (C,), 0.1),
            "qkv1_w": nrm(ks[4], (3 * C, C), 0.1),     # conv_nd(1, C, 3C, 1) weight (squeezed)
            "qkv1_b": nrm(ks[5], (3 * C,), 0.02),
            "qkv2_w": nrm(ks[6], (3 * C, C), 0.1),
            "qkv2_b": nrm(ks[7], (3 * C,), 0.02),
            "proj1_w": nrm(ks[8], (C, C), 0.1),
            "proj1_b": nrm(ks[9], (C,), 0.02),
            "proj2_w": nrm(ks[10], (C, C), 0.1),
            "proj2_b": nrm(ks[11], (C,), 0.02),
        }

    def __call__(self, x1, x2):
        assert x1.shape == x2.shape and x1.shape[1] == self.channels
        return mutual_attention_forward(x1, x2, self.params, self.num_heads,
                                        self.use_new_attention_order)


# ---------------------------------------------------------------------------
# Pure-JAX f32 reference (mirrors the PyTorch semantics) for validation.
# ---------------------------------------------------------------------------
def _ref_split_heads(qkv, H, new_order):
    b, width, T = qkv.shape
    ch = width // (3 * H)
    if new_order:
        q, k, v = jnp.split(qkv, 3, axis=1)
        return (q.reshape(b * H, ch, T), k.reshape(b * H, ch, T), v.reshape(b * H, ch, T))
    r = qkv.reshape(b * H, 3 * ch, T)
    return r[:, :ch], r[:, ch:2 * ch], r[:, 2 * ch:]


def _ref_cross_attention(qkv_q, qkv_kv, H, new_order):
    b, _, T = qkv_q.shape
    q, _, _ = _ref_split_heads(qkv_q, H, new_order)
    _, k, v = _ref_split_heads(qkv_kv, H, new_order)
    ch = q.shape[1]
    scale = 1.0 / math.sqrt(math.sqrt(ch))
    w = jnp.einsum("bct,bcs->bts", q * scale, k * scale)
    w = jax.nn.softmax(w, axis=-1)
    a = jnp.einsum("bts,bcs->bct", w, v)
    return a.reshape(b, -1, T)


def reference_forward(x1, x2, params, num_heads, new_order=False):
    b, c = x1.shape[:2]
    T = int(np.prod(x1.shape[2:]))
    x1f = x1.reshape(b, c, T).astype(jnp.float32)
    x2f = x2.reshape(b, c, T).astype(jnp.float32)

    def gnorm(x, g, be):
        xg = x.reshape(b, GN_GROUPS, -1)
        mu = xg.mean(axis=-1, keepdims=True)
        var = xg.var(axis=-1, keepdims=True)
        xn = ((xg - mu) / jnp.sqrt(var + GN_EPS)).reshape(b, c, T)
        return xn * g[None, :, None] + be[None, :, None]

    def conv1(x, w, bias):
        return jnp.einsum("oc,bct->bot", w, x) + bias[None, :, None]

    qkv1 = conv1(gnorm(x1f, params["norm1_g"], params["norm1_b"]), params["qkv1_w"], params["qkv1_b"])
    qkv2 = conv1(gnorm(x2f, params["norm2_g"], params["norm2_b"]), params["qkv2_w"], params["qkv2_b"])
    h1 = _ref_cross_attention(qkv1, qkv2, num_heads, new_order)
    h2 = _ref_cross_attention(qkv2, qkv1, num_heads, new_order)
    h1 = conv1(h1, params["proj1_w"], params["proj1_b"])
    h2 = conv1(h2, params["proj2_w"], params["proj2_b"])
    return (x1f + h1).reshape(x1.shape), (x2f + h2).reshape(x2.shape)


# ---------------------------------------------------------------------------
if __name__ == "__main__":
    key = jax.random.PRNGKey(0)
    k1, k2, k3, k4, km1, km2 = jax.random.split(key, 6)

    # Test 1: legacy attention order, tiny shape (single KV step, full-T blocks).
    B, C, Hs, Ws = 2, 32, 8, 8          # T = 64, heads=4 -> ch=8
    x1 = jax.random.normal(k1, (B, C, Hs, Ws), dtype=jnp.float32)
    x2 = jax.random.normal(k2, (B, C, Hs, Ws), dtype=jnp.float32)
    blk = MutualAttentionBlock(C, num_heads=4, key=km1)
    y1, y2 = blk(x1, x2)
    y1 = jax.block_until_ready(y1)
    y2 = jax.block_until_ready(y2)
    assert y1.shape == x1.shape and y2.shape == x2.shape
    r1, r2 = reference_forward(x1, x2, blk.params, blk.num_heads, blk.use_new_attention_order)
    np.testing.assert_allclose(np.asarray(y1), np.asarray(r1), rtol=2e-2, atol=2e-2)
    np.testing.assert_allclose(np.asarray(y2), np.asarray(r2), rtol=2e-2, atol=2e-2)

    # Test 2: new attention order, larger T -> exercises T tiling in A/C,
    # multi-step online softmax over the KV axis, and multi-head packing in B.
    B, C, Hs, Ws = 1, 64, 32, 32        # T = 1024, heads=8 -> ch=8
    x1 = jax.random.normal(k3, (B, C, Hs, Ws), dtype=jnp.float32)
    x2 = jax.random.normal(k4, (B, C, Hs, Ws), dtype=jnp.float32)
    blk = MutualAttentionBlock(C, num_heads=8, use_new_attention_order=True, key=km2)
    y1, y2 = blk(x1, x2)
    y1 = jax.block_until_ready(y1)
    y2 = jax.block_until_ready(y2)
    r1, r2 = reference_forward(x1, x2, blk.params, blk.num_heads, blk.use_new_attention_order)
    np.testing.assert_allclose(np.asarray(y1), np.asarray(r1), rtol=2e-2, atol=3e-2)
    np.testing.assert_allclose(np.asarray(y2), np.asarray(r2), rtol=2e-2, atol=3e-2)

    print("KERNEL_OK")
</pallas_src>

<mosaic_0001>
module attributes {stable_mosaic.version = 11 : i64} {
  func.func @_norm_qkv_kernel(%arg0: i32, %arg1: i32, %arg2: memref<1x32x64xf32, #tpu.memory_space<vmem>>, %arg3: memref<1x32x1xf32, #tpu.memory_space<vmem>>, %arg4: memref<1x32x1xf32, #tpu.memory_space<vmem>>, %arg5: memref<96x32xbf16, #tpu.memory_space<vmem>>, %arg6: memref<96x1xf32, #tpu.memory_space<vmem>>, %arg7: memref<1x96x64xbf16, #tpu.memory_space<vmem>>) attributes {dimension_semantics = [#tpu.dimension_semantics<parallel>, #tpu.dimension_semantics<parallel>], iteration_bounds = array<i64: 2, 1>, scalar_prefetch = 0 : i64, scratch_operands = 0 : i64, tpu.core_type = #tpu.core_type<tc>, window_params = [{transform_indices = @transform_0, window_bounds = array<i64: 1, 32, 64>}, {transform_indices = @transform_1, window_bounds = array<i64: 1, 32, 1>}, {transform_indices = @transform_2, window_bounds = array<i64: 1, 32, 1>}, {pipeline_mode = #tpu.pipeline_mode<synchronous>, transform_indices = @transform_3, window_bounds = array<i64: 96, 32>}, {pipeline_mode = #tpu.pipeline_mode<synchronous>, transform_indices = @transform_4, window_bounds = array<i64: 96, 1>}, {transform_indices = @transform_5, window_bounds = array<i64: 1, 96, 64>}]} {
    %c0 = arith.constant 0 : index
    %c0_0 = arith.constant 0 : index
    %c0_1 = arith.constant 0 : index
    %0 = vector.load %arg2[%c0, %c0_0, %c0_1] : memref<1x32x64xf32, #tpu.memory_space<vmem>>, vector<1x32x64xf32>
    %1 = vector.shape_cast %0 : vector<1x32x64xf32> to vector<32x64xf32>
    %c0_2 = arith.constant 0 : index
    %c0_3 = arith.constant 0 : index
    %c0_4 = arith.constant 0 : index
    %2 = vector.load %arg3[%c0_2, %c0_3, %c0_4] : memref<1x32x1xf32, #tpu.memory_space<vmem>>, vector<1x32x1xf32>
    %3 = vector.shape_cast %2 : vector<1x32x1xf32> to vector<32x1xf32>
    %4 = vector.broadcast %3 : vector<32x1xf32> to vector<32x64xf32>
    %5 = arith.mulf %1, %4 : vector<32x64xf32>
    %c0_5 = arith.constant 0 : index
    %c0_6 = arith.constant 0 : index
    %c0_7 = arith.constant 0 : index
    %6 = vector.load %arg4[%c0_5, %c0_6, %c0_7] : memref<1x32x1xf32, #tpu.memory_space<vmem>>, vector<1x32x1xf32>
    %7 = vector.shape_cast %6 : vector<1x32x1xf32> to vector<32x1xf32>
    %8 = vector.broadcast %7 : vector<32x1xf32> to vector<32x64xf32>
    %9 = arith.addf %5, %8 : vector<32x64xf32>
    %c0_8 = arith.constant 0 : index
    %c0_9 = arith.constant 0 : index
    %10 = vector.load %arg5[%c0_8, %c0_9] : memref<96x32xbf16, #tpu.memory_space<vmem>>, vector<96x32xbf16>
    %11 = arith.truncf %9 : vector<32x64xf32> to vector<32x64xbf16>
    %cst = arith.constant dense<0.000000e+00> : vector<96x64xf32>
    %12 = tpu.matmul %10, %11, %cst {dimension_numbers = #tpu.dot_dimension_numbers<[1], [0], [0], [1], [0, 0, 1, 1], [], []>} : vector<96x32xbf16>, vector<32x64xbf16>, vector<96x64xf32> -> vector<96x64xf32>
    %c0_10 = arith.constant 0 : index
    %c0_11 = arith.constant 0 : index
    %13 = vector.load %arg6[%c0_10, %c0_11] : memref<96x1xf32, #tpu.memory_space<vmem>>, vector<96x1xf32>
    %14 = vector.broadcast %13 : vector<96x1xf32> to vector<96x64xf32>
    %15 = arith.addf %12, %14 : vector<96x64xf32>
    %16 = arith.truncf %15 : vector<96x64xf32> to vector<96x64xbf16>
    %c0_12 = arith.constant 0 : index
    %c0_13 = arith.constant 0 : index
    %c0_14 = arith.constant 0 : index
    %17 = vector.load %arg7[%c0_12, %c0_13, %c0_14] : memref<1x96x64xbf16, #tpu.memory_space<vmem>>, vector<1x96x64xbf16>
    %18 = vector.shape_cast %17 : vector<1x96x64xbf16> to vector<96x64xbf16>
    %19 = vector.shape_cast %16 : vector<96x64xbf16> to vector<1x96x64xbf16>
    tpu.vector_store %arg7[%c0_12, %c0_13, %c0_14], %19 {strides = array<i32>} : memref<1x96x64xbf16, #tpu.memory_space<vmem>>, vector<1x96x64xbf16>,
    return
  }
  func.func @transform_0(%arg0: i32, %arg1: i32) -> (i32, i32, i32) {
    %c0_i32 = arith.constant 0 : i32
    %c0_i32_0 = arith.constant 0 : i32
    return %arg0, %c0_i32, %arg1 : i32, i32, i32
  }
  func.func @transform_1(%arg0: i32, %arg1: i32) -> (i32, i32, i32) {
    %c0_i32 = arith.constant 0 : i32
    %c0_i32_0 = arith.constant 0 : i32
    %c0_i32_1 = arith.constant 0 : i32
    return %arg0, %c0_i32, %c0_i32_0 : i32, i32, i32
  }
  func.func @transform_2(%arg0: i32, %arg1: i32) -> (i32, i32, i32) {
    %c0_i32 = arith.constant 0 : i32
    %c0_i32_0 = arith.constant 0 : i32
    %c0_i32_1 = arith.constant 0 : i32
    return %arg0, %c0_i32, %c0_i32_0 : i32, i32, i32
  }
  func.func @transform_3(%arg0: i32, %arg1: i32) -> (i32, i32) {
    %c0_i32 = arith.constant 0 : i32
    %c0_i32_0 = arith.constant 0 : i32
    %c0_i32_1 = arith.constant 0 : i32
    return %c0_i32, %c0_i32_0 : i32, i32
  }
  func.func @transform_4(%arg0: i32, %arg1: i32) -> (i32, i32) {
    %c0_i32 = arith.constant 0 : i32
    %c0_i32_0 = arith.constant 0 : i32
    %c0_i32_1 = arith.constant 0 : i32
    return %c0_i32, %c0_i32_0 : i32, i32
  }
  func.func @transform_5(%arg0: i32, %arg1: i32) -> (i32, i32, i32) {
    %c0_i32 = arith.constant 0 : i32
    %c0_i32_0 = arith.constant 0 : i32
    return %arg0, %c0_i32, %arg1 : i32, i32, i32
  }
}

</mosaic_0001>

<bundles_post_ra>
// kernel: tpu_custom_call.1
= control target key start
LH: loop header
LB: loop body
LE: loop exit
PB: predicated region body
PF: predicated region fallthrough
CT: control target
= control target key end

     0   :  { %s806_s18 = smov 0   ;;  %s808_s19 = smov 0   ;;  %s934_s0 = inlined_call_operand.vmem [shape: f32[2,32,64], index: 0, kind: input, shape index: {}]   ;;  %s935_s1 = inlined_call_operand.vmem [shape: f32[2,32,1], index: 1, kind: input, shape index: {}]   ;;  %s936_s2 = inlined_call_operand.vmem [shape: f32[2,32,1], index: 2, kind: input, shape index: {}]   ;;  %s937_s3 = inlined_call_operand.vmem [shape: bf16[96,32], index: 3, kind: input, shape index: {}]   ;;  %s938_s4 = inlined_call_operand.vmem [shape: f32[96,1], index: 4, kind: input, shape index: {}]   ;;  %s939_s5 = inlined_call_operand.vmem [shape: bf16[2,96,64], index: 5, kind: output, shape index: {}]  }
   0x1   :  { %s810_s20 = smov 0  }
   0x2 LB: > { %s27_s21 = sadd.s32 1, %s769_s19  ;;  %p667_p0 = scmp.ge.s32.totalorder %s773_s20, 1  ;;  %s773_s20 = sphi %s810_s20, %s15_s20   ;;  %s769_s19 = sphi %s808_s19, %s941_s19   ;;  %s765_s18 = sphi %s806_s18, %s940_s18  }
   0x3   : > { %p29_p1 = scmp.ge.s32.totalorder %s27_s21, 2  ;;  %p226_p2 = scmp.lt.s32.totalorder %s773_s20, 3 }
   0x5   : > { %s943_s21 = smov (%p29_p1, %s27_s21), 0  ;;  %p227_p3 = pnand %p667_p0, %p226_p2 }
   0x6   : > { %p270_p4 = scmp.lt.s32.totalorder (!%p227_p3), %s765_s18, 1 }
   0x7   : > { %230 = sbr.rel (%p227_p3) target bundleno = 317 (0x13d), region = 40 }
   0xc   : > { %v775_v0 = vmov 0   ;;  %s945_s18 = smov (!%p270_p4, %s765_s18), 1  ;;  %v371_v9 = vld [vmem:[%s938_s4] sm:$0xff]  ;;  %v373_v10 = vld [vmem:[%s938_s4 + $0x10] sm:$0xff]  ;;  %v372_v11 = vld [vmem:[%s938_s4 + $0x8] sm:$0xff]  ;;  %vm473_vm0 = vcmask 261120  }
   0xd   : > { %750 = vset.pattern.permute.xlu2 %v775_v0  ;;  %749 = vset.pattern.permute.xlu1 %v775_v0  ;;  %s827_s22 = sshll.u32 %s945_s18, 5  ;;  %v374_v12 = vld [vmem:[%s938_s4 + $0x18] sm:$0xff]  ;;  %v376_v13 = vld [vmem:[%s938_s4 + $0x28] sm:$0xff]  ;;  %v375_v14 = vld [vmem:[%s938_s4 + $0x20] sm:$0xff]  ;;  %s722_s27 = smul.u32 48, %s945_s18  ;;  %vm543_vm1 = vcmask 519168  }
   0xe   : > { %748 = vset.pattern.permute.xlu0 %v775_v0  ;;  %s287_s25 = scalar_lea.vmem %s936_s2, %s827_s22  ;;  %s282_s28 = scalar_lea.vmem %s935_s1, %s827_s22  ;;  %v377_v15 = vld [vmem:[%s938_s4 + $0x30] sm:$0xff]  ;;  %v379_v16 = vld [vmem:[%s938_s4 + $0x40] sm:$0xff]  ;;  %v378_v17 = vld [vmem:[%s938_s4 + $0x38] sm:$0xff] }
   0xf   : > { %v331_v1 = vld [vmem:[%s287_s25 + $0x10] sm:$0xff]  ;;  %v301_v3 = vld [vmem:[%s282_s28] sm:$0xff]  ;;  %v332_v4 = vld [vmem:[%s287_s25 + $0x18] sm:$0xff]  ;;  %s277_s10 = scalar_lea.vmem %s934_s0, %s827_s22  ;;  %s899_s30 = scalar_lea.vmem %s939_s5, %s722_s27 }
  0x10   : > { %v303_v2 = vld [vmem:[%s282_s28 + $0x10] sm:$0xff]  ;;  %345 = vperm.xlu1 %749, %v331_v1   ;;  %307 = vperm.xlu2 %750, %v301_v3   ;;  %v304_v5 = vld [vmem:[%s282_s28 + $0x18] sm:$0xff]  ;;  %v302_v6 = vld [vmem:[%s282_s28 + $0x8] sm:$0xff] }
  0x11   : > { %317 = vperm.xlu0 %748, %v303_v2   ;;  %v330_v7 = vld [vmem:[%s287_s25 + $0x8] sm:$0xff]  ;;  %v329_v8 = vld [vmem:[%s287_s25] sm:$0xff]  ;;  %v382_v19 = vld [vmem:[%s938_s4 + $0x58] sm:$0xff] }
  0x12   : > { %v380_v18 = vld [vmem:[%s938_s4 + $0x48] sm:$0xff]  ;;  %v381_v20 = vld [vmem:[%s938_s4 + $0x50] sm:$0xff]  ;;  %v300_v25 = vld [vmem:[%s277_s10 + $0x18] sm:$0xff] }
  0x13   : > { %v299_v24 = vld [vmem:[%s277_s10 + $0x10] sm:$0xff]  ;;  %v297_v32 = vld [vmem:[%s277_s10] sm:$0xff]  ;;  %v298_v33 = vld [vmem:[%s277_s10 + $0x8] sm:$0xff] }
  0x14   : > { %v710_v43 = vld [vmem:[%s937_s3] sm:$0xff]  ;;  %v711_v44 = vld [vmem:[%s937_s3 + $0x8] sm:$0xff]  ;;  %v713_v45 = vld [vmem:[%s937_s3 + $0x18] sm:$0xff] }
  0x15   : > { %v715_v46 = vld [vmem:[%s937_s3 + $0x28] sm:$0xff]  ;;  %v712_v47 = vld [vmem:[%s937_s3 + $0x10] sm:$0xff]  ;;  %v714_v48 = vld [vmem:[%s937_s3 + $0x20] sm:$0xff] }
  0x18   : > { %350 = vperm.xlu1 %749, %v332_v4   ;;  %312 = vperm.xlu2 %750, %v302_v6  }
  0x19   : > { %322 = vperm.xlu0 %748, %v304_v5  }
  0x20   : > { %340 = vperm.xlu1 %749, %v330_v7   ;;  %385 = vperm.xlu2 %750, %v371_v9  }
  0x21   : > { %335 = vperm.xlu0 %748, %v329_v8  }
  0x28   : > { %395 = vperm.xlu1 %749, %v373_v10   ;;  %400 = vperm.xlu2 %750, %v374_v12  }
  0x29   : > { %390 = vperm.xlu0 %748, %v372_v11  }
  0x30   : > { %410 = vperm.xlu1 %749, %v376_v13   ;;  %415 = vperm.xlu2 %750, %v377_v15  }
  0x31   : > { %405 = vperm.xlu0 %748, %v375_v14  }
  0x38   : > { %425 = vperm.xlu1 %749, %v379_v16   ;;  %430 = vperm.xlu2 %750, %v380_v18  }
  0x39   : > { %420 = vperm.xlu0 %748, %v378_v17  }
  0x40   : > { %440 = vperm.xlu1 %749, %v382_v19  }
  0x41   : > { %435 = vperm.xlu0 %748, %v381_v20  }
  0x6a   : > { %v308_v23 = vpop.permute.xlu2 %307 }
  0x6b   : > { %v325_v36 = vmul.f32 %v308_v23, %v297_v32 }
  0x72   : > { %v313_v35 = vpop.permute.xlu2 %312 }
  0x73   : > { %v326_v37 = vmul.f32 %v313_v35, %v298_v33 }
  0x7a   : > { %v386_v51 = vpop.permute.xlu2 %385 }
  0x82   : > { %v346_v21 = vpop.permute.xlu1 %345  ;;  %v401_v54 = vpop.permute.xlu2 %400 }
  0x83   : > { %v318_v22 = vpop.permute.xlu0 %317 }
  0x84   : > { %v327_v26 = vmul.f32 %v318_v22, %v299_v24 }
  0x86   : > { %v355_v30 = vadd.f32 %v346_v21, %v327_v26 }
  0x8a   : > { %v351_v27 = vpop.permute.xlu1 %350  ;;  %v416_v63 = vpop.permute.xlu2 %415 }
  0x8b   : > { %v323_v28 = vpop.permute.xlu0 %322 }
  0x8c   : > { %v328_v29 = vmul.f32 %v323_v28, %v300_v25 }
  0x8e   : > { %v356_v31 = vadd.f32 %v351_v27, %v328_v29 }
  0x90   : > { %v370_v34 = vpack.c.bf16 %v356_v31, %v355_v30 }
  0x92   : > { %498 = vmatpush.bf16.msra.mxu0 %v370_v34  ;;  %716 = vmatpush.bf16.msra.mxu1 %v370_v34  ;;  %v341_v38 = vpop.permute.xlu1 %340  ;;  %v431_v29 = vpop.permute.xlu2 %430 }
  0x93   : > { %717 = vmatpush.bf16.msra.mxu2 %v370_v34  ;;  %718 = vmatpush.bf16.msra.mxu3 %v370_v34  ;;  %v336_v39 = vpop.permute.xlu0 %335  ;;  %v354_v40 = vadd.f32 %v341_v38, %v326_v37 }
  0x94   : > { %v353_v41 = vadd.f32 %v336_v39, %v325_v36 }
  0x96   : > { %v369_v42 = vpack.c.bf16 %v354_v40, %v353_v41 }
  0x98   : > { %499 = vmatpush.bf16.msra.mxu0 %v369_v42  ;;  %719 = vmatpush.bf16.msra.mxu1 %v369_v42 }
  0x99   : > { %720 = vmatpush.bf16.msra.mxu2 %v369_v42  ;;  %721 = vmatpush.bf16.msra.mxu3 %v369_v42 }
  0x9a   : > { %v396_v50 = vpop.permute.xlu1 %395 }
  0x9b   : > { %699 = vmatmul.msk.bf16.vlgmr.msra.gmra.mxu0 %vm473_vm0, %v710_v43  ;;  %700 = vmatmul.msk.bf16.vlgmr.msra.gmra.mxu1 %vm473_vm0, %v711_v44  ;;  %v391_v49 = vpop.permute.xlu0 %390 }
  0x9c   : > { %702 = vmatmul.msk.bf16.vlgmr.msra.gmra.mxu2 %vm473_vm0, %v713_v45  ;;  %704 = vmatmul.msk.bf16.vlgmr.msra.gmra.mxu3 %vm473_vm0, %v715_v46 }
  0xa2   : > { %v411_v53 = vpop.permute.xlu1 %410 }
  0xa3   : > { %v406_v52 = vpop.permute.xlu0 %405 }
  0xaa   : > { %v426_v62 = vpop.permute.xlu1 %425 }
  0xab   : > { %701 = vmatmul.msk.bf16.gmra.mxu1 %vm473_vm0, %v712_v47  ;;  %v421_v55 = vpop.permute.xlu0 %420 }
  0xac   : > { %703 = vmatmul.msk.bf16.gmra.mxu2 %vm473_vm0, %v714_v48 }
  0xb2   : > { %v441_v13 = vpop.permute.xlu1 %440 }
  0xb3   : > { %v436_v0 = vpop.permute.xlu0 %435 }
 0x118   : > { %v501_v56 = vpop.f32.mrf.mxu0  ;;  %v506_v57 = vpop.f32.mrf.mxu1 }
 0x119   : > { %v502_v58 = vadd.f32 %v501_v56, %v386_v51  ;;  %v507_v59 = vadd.f32 %v506_v57, %v396_v50 }
 0x11b   : > { %v531_v60 = vpack.c.bf16 %v502_v58, %v502_v58  ;;  %v533_v61 = vpack.c.bf16 %v507_v59, %v507_v59 }
 0x11d   : > { %544 = vst.msk [vmem:[%s899_s30] sm:$0xf] %vm543_vm1, %v531_v60 }
 0x11e   : > { %546 = vst.msk [vmem:[%s899_s30 + $0x8] sm:$0xf] %vm543_vm1, %v533_v61 }
 0x11f   : > { %v516_v1 = vpop.f32.mrf.mxu2  ;;  %v526_v2 = vpop.f32.mrf.mxu3 }
 0x120   : > { %v517_v3 = vadd.f32 %v516_v1, %v416_v63  ;;  %v527_v4 = vadd.f32 %v526_v2, %v436_v0  ;;  %v503_v5 = vpop.f32.mrf.mxu0  ;;  %v508_v6 = vpop.f32.mrf.mxu1 }
 0x121   : > { %v504_v7 = vadd.f32 %v503_v5, %v391_v49  ;;  %v509_v8 = vadd.f32 %v508_v6, %v401_v54 }
 0x122   : > { %v537_v9 = vpack.c.bf16 %v517_v3, %v517_v3  ;;  %v541_v10 = vpack.c.bf16 %v527_v4, %v527_v4 }
 0x123   : > { %v532_v11 = vpack.c.bf16 %v504_v7, %v504_v7  ;;  %v534_v12 = vpack.c.bf16 %v509_v8, %v509_v8 }
 0x124   : > { %550 = vst.msk [vmem:[%s899_s30 + $0x18] sm:$0xf] %vm543_vm1, %v537_v9 }
 0x125   : > { %554 = vst.msk [vmem:[%s899_s30 + $0x28] sm:$0xf] %vm543_vm1, %v541_v10 }
 0x126   : > { %545 = vst.msk [vmem:[%s899_s30 + $0x4] sm:$0xf] %vm543_vm1, %v532_v11 }
 0x127   : > { %547 = vst.msk [vmem:[%s899_s30 + $0xc] sm:$0xf] %vm543_vm1, %v534_v12  ;;  %v518_v14 = vpop.f32.mrf.mxu2  ;;  %v528_v15 = vpop.f32.mrf.mxu3 }
 0x128   : > { %v519_v16 = vadd.f32 %v518_v14, %v421_v55  ;;  %v529_v17 = vadd.f32 %v528_v15, %v441_v13  ;;  %v511_v18 = vpop.f32.mrf.mxu1 }
 0x129   : > { %v512_v19 = vadd.f32 %v511_v18, %v406_v52 }
 0x12a   : > { %v538_v20 = vpack.c.bf16 %v519_v16, %v519_v16  ;;  %v542_v21 = vpack.c.bf16 %v529_v17, %v529_v17 }
 0x12b   : > { %v535_v22 = vpack.c.bf16 %v512_v19, %v512_v19 }
 0x12c   : > { %551 = vst.msk [vmem:[%s899_s30 + $0x1c] sm:$0xf] %vm543_vm1, %v538_v20 }
 0x12d   : > { %555 = vst.msk [vmem:[%s899_s30 + $0x2c] sm:$0xf] %vm543_vm1, %v542_v21 }
 0x12e   : > { %548 = vst.msk [vmem:[%s899_s30 + $0x10] sm:$0xf] %vm543_vm1, %v535_v22 }
 0x12f   : > { %v521_v23 = vpop.f32.mrf.mxu2 }
 0x130   : > { %v522_v24 = vadd.f32 %v521_v23, %v426_v62  ;;  %v513_v25 = vpop.f32.mrf.mxu1 }
 0x131   : > { %v514_v26 = vadd.f32 %v513_v25, %v411_v53 }
 0x132   : > { %v539_v27 = vpack.c.bf16 %v522_v24, %v522_v24 }
 0x133   : > { %v536_v28 = vpack.c.bf16 %v514_v26, %v514_v26 }
 0x134   : > { %552 = vst.msk [vmem:[%s899_s30 + $0x20] sm:$0xf] %vm543_vm1, %v539_v27 }
 0x135   : > { %549 = vst.msk [vmem:[%s899_s30 + $0x14] sm:$0xf] %vm543_vm1, %v536_v28 }
 0x137   : > { %v523_v30 = vpop.f32.mrf.mxu2 }
 0x138   : > { %v524_v31 = vadd.f32 %v523_v30, %v431_v29 }
 0x13a   : > { %v540_v32 = vpack.c.bf16 %v524_v31, %v524_v31 }
 0x13c   : > { %553 = vst.msk [vmem:[%s899_s30 + $0x24] sm:$0xf] %vm543_vm1, %v540_v32 }
 0x13d PF: > { %s15_s20 = sadd.s32 1, %s773_s20   ;;  %s940_s18 = smov %s769_s19 }
 0x13e   : > { %p12_p5 = scmp.ge.s32.totalorder %s15_s20, 4   ;;  %s941_s19 = smov %s943_s21 }
 0x140   :  { %14 = sbr.rel (!%p12_p5) target bundleno = 2 (0x2), region = 76 }

</bundles_post_ra>
